<compile_context>
chip_gen: v6e
topology: v6e:2x2x1
jax: 0.10.0
libtpu: 0.0.40
codegen_flags: <defaults>
</compile_context>

<pallas_src>
import functools
import math

import jax
import jax.numpy as jnp
from jax.experimental import pallas as pl
from jax.experimental.pallas import tpu as pltpu

NEG_MASK = -1e9      # masked_fill value used by the PyTorch reference
LN_EPS = 1e-5        # nn.LayerNorm default eps


def layer_norm(x, gamma, beta, eps=LN_EPS):
    mu = jnp.mean(x, axis=-1, keepdims=True)
    xc = x - mu
    var = jnp.mean(xc * xc, axis=-1, keepdims=True)
    return xc * jax.lax.rsqrt(var + eps) * gamma + beta


def encoder_layer_kernel(x_ref, mask_ref,
                         wqkv_ref, bqkv_ref, wo_ref, bo_ref,
                         g1_ref, beta1_ref, g2_ref, beta2_ref,
                         w1_ref, b1_ref, w2_ref, b2_ref,
                         out_ref, *, num_heads):
    """One grid step == one block of `bb` sequences.

    x_ref    : (bb, S, E)     input sequences
    mask_ref : (S, S)         attention mask (0 => blocked), shared across batch
    wqkv_ref : (H, E, 3*Dh)   fused head-major q|k|v projection weight
    bqkv_ref : (H, 1, 3*Dh)   fused head-major q|k|v projection bias
    wo_ref   : (H, Dh, E)     head-major output projection weight
    bo_ref   : (1, E)         output projection bias
    g*/beta* : (1, E)         LayerNorm affine parameters
    w1/b1    : (E, FF)/(1,FF) FFN first linear
    w2/b2    : (FF, E)/(1,E)  FFN second linear
    out_ref  : (bb, S, E)     encoder-layer output
    """
    bb, S, E = x_ref.shape
    H = num_heads
    Dh = E // H
    G = bb * H                      # batched-attention groups = (sequence, head)
    R = bb * S                      # flattened rows for projections / LN / FFN
    inv_scale = 1.0 / math.sqrt(Dh)

    x3 = x_ref[...]                                   # (bb, S, E)
    x2d = x3.reshape(R, E)                            # rows flattened, lanes = E

    def per_group(w):
        # (H, ...) -> (G, ...): leading-axis broadcast + merge (no data movement)
        if bb == 1:
            return w
        return jnp.broadcast_to(w[None], (bb,) + w.shape).reshape(
            (G,) + w.shape[1:])

    # --- fused, head-major QKV projection: one batched einsum, no separate
    #     q/k/v matmuls and no per-head lane slicing of activations ---
    x_g = jnp.broadcast_to(x3[:, None], (bb, H, S, E)).reshape(G, S, E)
    qkv = jnp.einsum("gse,gef->gsf", x_g, per_group(wqkv_ref[...]),
                     preferred_element_type=jnp.float32) + per_group(bqkv_ref[...])

    q = qkv[..., :Dh] * inv_scale                     # scale hoisted, applied once
    k = qkv[..., Dh:2 * Dh]
    v = qkv[..., 2 * Dh:]

    # mask bias computed once; per-group work is a plain add
    mask_bias = jnp.where(mask_ref[...] == 0.0, NEG_MASK, 0.0)      # (S, S)

    scores = jnp.einsum("gqd,gkd->gqk", q, k,
                        preferred_element_type=jnp.float32) + mask_bias[None]
    m = jnp.max(scores, axis=-1, keepdims=True)
    p = jnp.exp(scores - m)
    denom = jnp.sum(p, axis=-1, keepdims=True)
    attn = p * pl.reciprocal(denom, approx=True)      # softmax denom on the EUP
    # TODO(synk): attention / residual / FFN dropouts are identity (eval mode).

    ctx = jnp.einsum("gqk,gkd->gqd", attn, v,
                     preferred_element_type=jnp.float32)            # (G, S, Dh)

    # --- output projection: per-head matmul + accumulation (no head concat) ---
    head_proj = jnp.einsum("gsd,gde->gse", ctx, per_group(wo_ref[...]),
                           preferred_element_type=jnp.float32)      # (G, S, E)
    hp = head_proj.reshape(bb, H, S, E)
    attn_out = hp[:, 0]
    for h in range(1, H):                             # unrolled at trace time
        attn_out = attn_out + hp[:, h]
    attn_out = attn_out.reshape(R, E) + bo_ref[...]                 # (R, E)

    # --- residual + LayerNorm 1 (post-attention dropout = identity, eval) ---
    y = layer_norm(x2d + attn_out, g1_ref[...], beta1_ref[...])

    # --- FFN: Linear -> ReLU -> (Dropout = identity) -> Linear ---
    h1 = jnp.dot(y, w1_ref[...], preferred_element_type=jnp.float32) + b1_ref[...]
    h1 = jnp.maximum(h1, 0.0)
    ff = jnp.dot(h1, w2_ref[...], preferred_element_type=jnp.float32) + b2_ref[...]

    # --- residual + LayerNorm 2 ---
    out_ref[...] = layer_norm(y + ff, g2_ref[...], beta2_ref[...]).reshape(bb, S, E)


def _head_major_qkv(wq, bq, wk, bk, wv, bv, num_heads):
    """Fuse q/k/v projections into head-major (H, E, 3*Dh) / (H, 1, 3*Dh)."""
    E = wq.shape[0]
    Dh = E // num_heads

    def split_w(w):      # (E, E) -> (H, E, Dh)
        return w.reshape(E, num_heads, Dh).transpose(1, 0, 2)

    def split_b(b):      # (1, E) -> (H, 1, Dh)
        return b.reshape(num_heads, Dh)[:, None, :]

    wqkv = jnp.concatenate([split_w(wq), split_w(wk), split_w(wv)], axis=-1)
    bqkv = jnp.concatenate([split_b(bq), split_b(bk), split_b(bv)], axis=-1)
    return wqkv, bqkv


def transformer_encoder_layer(x, mask, params, num_heads):
    """x: (B, S, E), mask: (S, S) with 0 == blocked. Returns (B, S, E)."""
    B, S, E = x.shape
    Dh = E // num_heads

    # Parameter layout prep (would be done once at load time in a real model):
    # fused head-major QKV weight/bias and head-major output-projection weight.
    wqkv, bqkv = _head_major_qkv(params["wq"], params["bq"], params["wk"],
                                 params["bk"], params["wv"], params["bv"],
                                 num_heads)
    wo_heads = params["wo"].reshape(num_heads, Dh, E)

    # Pack as many sequences as possible per grid step (flattened rows inside
    # the kernel) while keeping >=2 "parallel" steps so both v7x TCs are used.
    bb = B // 2 if (B >= 2 and B % 2 == 0) else 1
    grid = (B // bb,)

    weights = [wqkv, bqkv, wo_heads, params["bo"],
               params["g1"], params["beta1"], params["g2"], params["beta2"],
               params["w1"], params["b1"], params["w2"], params["b2"]]

    def full_spec(arr):
        # Grid-invariant (resident) block covering the whole parameter.
        return pl.BlockSpec(arr.shape, lambda i: (0,) * arr.ndim)

    grid_spec = pltpu.PrefetchScalarGridSpec(
        num_scalar_prefetch=0,
        grid=grid,
        in_specs=[pl.BlockSpec((bb, S, E), lambda i: (i, 0, 0)),   # x
                  pl.BlockSpec((S, S), lambda i: (0, 0))]          # mask (shared)
                 + [full_spec(w) for w in weights],
        out_specs=pl.BlockSpec((bb, S, E), lambda i: (i, 0, 0)),
    )

    return pl.pallas_call(
        functools.partial(encoder_layer_kernel, num_heads=num_heads),
        out_shape=jax.ShapeDtypeStruct((B, S, E), jnp.float32),
        grid_spec=grid_spec,
        compiler_params=pltpu.CompilerParams(
            dimension_semantics=("parallel",),
            vmem_limit_bytes=32 * 1024 * 1024),
    )(x, mask, *weights)


def reference_encoder_layer(x, mask, params, num_heads):
    """Pure-JAX reference mirroring the PyTorch forward (eval mode)."""
    B, S, E = x.shape
    Dh = E // num_heads
    q = x @ params["wq"] + params["bq"]
    k = x @ params["wk"] + params["bk"]
    v = x @ params["wv"] + params["bv"]

    def split_heads(t):
        return t.reshape(B, S, num_heads, Dh).transpose(0, 2, 1, 3)

    qh, kh, vh = split_heads(q), split_heads(k), split_heads(v)
    scores = jnp.einsum("bhqd,bhkd->bhqk", qh, kh) / math.sqrt(Dh)
    scores = jnp.where(mask[None, None] == 0, NEG_MASK, scores)
    attn = jax.nn.softmax(scores, axis=-1)
    ctx = jnp.einsum("bhqk,bhkd->bhqd", attn, vh)
    ctx = ctx.transpose(0, 2, 1, 3).reshape(B, S, E)
    attn_out = ctx @ params["wo"] + params["bo"]

    y = layer_norm(x + attn_out, params["g1"], params["beta1"])
    h1 = jnp.maximum(y @ params["w1"] + params["b1"], 0.0)
    ff = h1 @ params["w2"] + params["b2"]
    return layer_norm(y + ff, params["g2"], params["beta2"])


if __name__ == "__main__":
    B, S, E, H, FF = 2, 8, 32, 4, 64    # batch, seq, embed_dim, heads, ff_dim

    key = jax.random.PRNGKey(0)
    ks = jax.random.split(key, 18)

    def linear(kw, kb, fan_in, w_shape, b_shape):
        lim = 1.0 / math.sqrt(fan_in)
        return (jax.random.uniform(kw, w_shape, jnp.float32, -lim, lim),
                jax.random.uniform(kb, b_shape, jnp.float32, -lim, lim))

    wq, bq = linear(ks[0], ks[1], E, (E, E), (1, E))
    wk, bk = linear(ks[2], ks[3], E, (E, E), (1, E))
    wv, bv = linear(ks[4], ks[5], E, (E, E), (1, E))
    wo, bo = linear(ks[6], ks[7], E, (E, E), (1, E))
    w1, b1 = linear(ks[8], ks[9], E, (E, FF), (1, FF))
    w2, b2 = linear(ks[10], ks[11], FF, (FF, E), (1, E))

    params = dict(
        wq=wq, bq=bq, wk=wk, bk=bk, wv=wv, bv=bv, wo=wo, bo=bo,
        g1=1.0 + 0.1 * jax.random.normal(ks[12], (1, E), jnp.float32),
        beta1=0.1 * jax.random.normal(ks[13], (1, E), jnp.float32),
        g2=1.0 + 0.1 * jax.random.normal(ks[14], (1, E), jnp.float32),
        beta2=0.1 * jax.random.normal(ks[15], (1, E), jnp.float32),
        w1=w1, b1=b1, w2=w2, b2=b2,
    )

    x = jax.random.normal(ks[16], (B, S, E), jnp.float32)
    mask = jnp.tril(jnp.ones((S, S), jnp.float32))   # causal mask: 0 == blocked

    out = transformer_encoder_layer(x, mask, params, num_heads=H)
    jax.block_until_ready(out)

    with jax.default_matmul_precision("highest"):    # gold-standard reference
        ref = reference_encoder_layer(x, mask, params, num_heads=H)
    ref = jax.block_until_ready(ref)

    assert out.shape == (B, S, E)
    err = float(jnp.max(jnp.abs(out - ref)))
    # 1e-2 headroom: approx (EUP) softmax reciprocal + default-precision MXU
    # matmul passes in the kernel vs. the forced-'highest' pure-JAX reference.
    assert err < 1e-2, err

    print("KERNEL_OK")
</pallas_src>

<mosaic_0001>
module attributes {stable_mosaic.version = 11 : i64} {
  func.func @encoder_layer_kernel(%arg0: i32, %arg1: memref<1x8x32xf32, #tpu.memory_space<vmem>>, %arg2: memref<8x8xf32, #tpu.memory_space<vmem>>, %arg3: memref<4x32x24xf32, #tpu.memory_space<vmem>>, %arg4: memref<4x1x24xf32, #tpu.memory_space<vmem>>, %arg5: memref<4x8x32xf32, #tpu.memory_space<vmem>>, %arg6: memref<1x32xf32, #tpu.memory_space<vmem>>, %arg7: memref<1x32xf32, #tpu.memory_space<vmem>>, %arg8: memref<1x32xf32, #tpu.memory_space<vmem>>, %arg9: memref<1x32xf32, #tpu.memory_space<vmem>>, %arg10: memref<1x32xf32, #tpu.memory_space<vmem>>, %arg11: memref<32x64xf32, #tpu.memory_space<vmem>>, %arg12: memref<1x64xf32, #tpu.memory_space<vmem>>, %arg13: memref<64x32xf32, #tpu.memory_space<vmem>>, %arg14: memref<1x32xf32, #tpu.memory_space<vmem>>, %arg15: memref<1x8x32xf32, #tpu.memory_space<vmem>>) attributes {dimension_semantics = [#tpu.dimension_semantics<parallel>], iteration_bounds = array<i64: 2>, scalar_prefetch = 0 : i64, scratch_operands = 0 : i64, tpu.core_type = #tpu.core_type<tc>, window_params = [{transform_indices = @transform_0, window_bounds = array<i64: 1, 8, 32>}, {pipeline_mode = #tpu.pipeline_mode<synchronous>, transform_indices = @transform_1, window_bounds = array<i64: 8, 8>}, {pipeline_mode = #tpu.pipeline_mode<synchronous>, transform_indices = @transform_2, window_bounds = array<i64: 4, 32, 24>}, {pipeline_mode = #tpu.pipeline_mode<synchronous>, transform_indices = @transform_3, window_bounds = array<i64: 4, 1, 24>}, {pipeline_mode = #tpu.pipeline_mode<synchronous>, transform_indices = @transform_4, window_bounds = array<i64: 4, 8, 32>}, {pipeline_mode = #tpu.pipeline_mode<synchronous>, transform_indices = @transform_5, window_bounds = array<i64: 1, 32>}, {pipeline_mode = #tpu.pipeline_mode<synchronous>, transform_indices = @transform_6, window_bounds = array<i64: 1, 32>}, {pipeline_mode = #tpu.pipeline_mode<synchronous>, transform_indices = @transform_7, window_bounds = array<i64: 1, 32>}, {pipeline_mode = #tpu.pipeline_mode<synchronous>, transform_indices = @transform_8, window_bounds = array<i64: 1, 32>}, {pipeline_mode = #tpu.pipeline_mode<synchronous>, transform_indices = @transform_9, window_bounds = array<i64: 1, 32>}, {pipeline_mode = #tpu.pipeline_mode<synchronous>, transform_indices = @transform_10, window_bounds = array<i64: 32, 64>}, {pipeline_mode = #tpu.pipeline_mode<synchronous>, transform_indices = @transform_11, window_bounds = array<i64: 1, 64>}, {pipeline_mode = #tpu.pipeline_mode<synchronous>, transform_indices = @transform_12, window_bounds = array<i64: 64, 32>}, {pipeline_mode = #tpu.pipeline_mode<synchronous>, transform_indices = @transform_13, window_bounds = array<i64: 1, 32>}, {transform_indices = @transform_14, window_bounds = array<i64: 1, 8, 32>}]} {
    %c0 = arith.constant 0 : index
    %c0_0 = arith.constant 0 : index
    %c0_1 = arith.constant 0 : index
    %0 = vector.load %arg1[%c0, %c0_0, %c0_1] : memref<1x8x32xf32, #tpu.memory_space<vmem>>, vector<1x8x32xf32>
    %1 = vector.shape_cast %0 : vector<1x8x32xf32> to vector<8x32xf32>
    %2 = vector.shape_cast %0 : vector<1x8x32xf32> to vector<1x1x8x32xf32>
    %3 = vector.shape_cast %2 : vector<1x1x8x32xf32> to vector<1x1x8x32xf32>
    %4 = vector.broadcast %3 : vector<1x1x8x32xf32> to vector<1x4x8x32xf32>
    %5 = vector.shape_cast %4 : vector<1x4x8x32xf32> to vector<4x8x32xf32>
    %c0_2 = arith.constant 0 : index
    %c0_3 = arith.constant 0 : index
    %c0_4 = arith.constant 0 : index
    %6 = vector.load %arg3[%c0_2, %c0_3, %c0_4] : memref<4x32x24xf32, #tpu.memory_space<vmem>>, vector<4x32x24xf32>
    "tpu.trace_start"() <{level = 10 : i32, message = "gse,gef->gsf"}> : () -> ()
    %cst = arith.constant dense<0.000000e+00> : vector<4x8x24xf32>
    %7 = tpu.matmul %5, %6, %cst {dimension_numbers = #tpu.dot_dimension_numbers<[2], [1], [1], [2], [0, 0, 0, 1, 1, 2], [0], [0]>} : vector<4x8x32xf32>, vector<4x32x24xf32>, vector<4x8x24xf32> -> vector<4x8x24xf32>
    "tpu.trace_stop"() : () -> ()
    %c0_5 = arith.constant 0 : index
    %c0_6 = arith.constant 0 : index
    %c0_7 = arith.constant 0 : index
    %8 = vector.load %arg4[%c0_5, %c0_6, %c0_7] : memref<4x1x24xf32, #tpu.memory_space<vmem>>, vector<4x1x24xf32>
    %9 = vector.broadcast %8 : vector<4x1x24xf32> to vector<4x8x24xf32>
    %10 = arith.addf %7, %9 : vector<4x8x24xf32>
    %11 = vector.extract_strided_slice %10 {offsets = [0, 0, 0], sizes = [4, 8, 8], strides = [1, 1, 1]} : vector<4x8x24xf32> to vector<4x8x8xf32>
    %cst_8 = arith.constant 0.353553385 : f32
    %12 = vector.broadcast %cst_8 : f32 to vector<4x8x8xf32>
    %13 = arith.mulf %11, %12 : vector<4x8x8xf32>
    %14 = vector.extract_strided_slice %10 {offsets = [0, 0, 8], sizes = [4, 8, 8], strides = [1, 1, 1]} : vector<4x8x24xf32> to vector<4x8x8xf32>
    %15 = vector.extract_strided_slice %10 {offsets = [0, 0, 16], sizes = [4, 8, 8], strides = [1, 1, 1]} : vector<4x8x24xf32> to vector<4x8x8xf32>
    %c0_9 = arith.constant 0 : index
    %c0_10 = arith.constant 0 : index
    %16 = vector.load %arg2[%c0_9, %c0_10] : memref<8x8xf32, #tpu.memory_space<vmem>>, vector<8x8xf32>
    %cst_11 = arith.constant 0.000000e+00 : f32
    %17 = vector.broadcast %cst_11 : f32 to vector<8x8xf32>
    %18 = arith.cmpf oeq, %16, %17 : vector<8x8xf32>
    %cst_12 = arith.constant -1.000000e+09 : f32
    %cst_13 = arith.constant 0.000000e+00 : f32
    %19 = vector.broadcast %cst_12 : f32 to vector<8x8xf32>
    %20 = vector.broadcast %cst_13 : f32 to vector<8x8xf32>
    %21 = arith.select %18, %19, %20 : vector<8x8xi1>, vector<8x8xf32>
    "tpu.trace_start"() <{level = 10 : i32, message = "gqd,gkd->gqk"}> : () -> ()
    %cst_14 = arith.constant dense<0.000000e+00> : vector<4x8x8xf32>
    %22 = tpu.matmul %13, %14, %cst_14 {dimension_numbers = #tpu.dot_dimension_numbers<[2], [2], [1], [1], [0, 0, 0, 1, 1, 1], [0], [0]>} : vector<4x8x8xf32>, vector<4x8x8xf32>, vector<4x8x8xf32> -> vector<4x8x8xf32>
    "tpu.trace_stop"() : () -> ()
    %23 = vector.shape_cast %21 : vector<8x8xf32> to vector<1x8x8xf32>
    %24 = vector.broadcast %23 : vector<1x8x8xf32> to vector<4x8x8xf32>
    %25 = arith.addf %22, %24 : vector<4x8x8xf32>
    %cst_15 = arith.constant dense<0xFF800000> : vector<4x8xf32>
    %26 = vector.multi_reduction <maximumf>, %25, %cst_15 [2] : vector<4x8x8xf32> to vector<4x8xf32>
    %27 = vector.shape_cast %26 : vector<4x8xf32> to vector<4x8x1xf32>
    %28 = vector.broadcast %27 : vector<4x8x1xf32> to vector<4x8x8xf32>
    %29 = arith.subf %25, %28 : vector<4x8x8xf32>
    %30 = math.exp %29 : vector<4x8x8xf32>
    %cst_16 = arith.constant dense<0.000000e+00> : vector<4x8xf32>
    %31 = vector.multi_reduction <add>, %30, %cst_16 [2] : vector<4x8x8xf32> to vector<4x8xf32>
    %32 = vector.shape_cast %31 : vector<4x8xf32> to vector<4x8x1xf32>
    %33 = tpu.reciprocal %32 {approx = true} : vector<4x8x1xf32> -> vector<4x8x1xf32>
    %34 = vector.broadcast %33 : vector<4x8x1xf32> to vector<4x8x8xf32>
    %35 = arith.mulf %30, %34 : vector<4x8x8xf32>
    "tpu.trace_start"() <{level = 10 : i32, message = "gqk,gkd->gqd"}> : () -> ()
    %cst_17 = arith.constant dense<0.000000e+00> : vector<4x8x8xf32>
    %36 = tpu.matmul %35, %15, %cst_17 {dimension_numbers = #tpu.dot_dimension_numbers<[2], [1], [1], [2], [0, 0, 0, 1, 1, 2], [0], [0]>} : vector<4x8x8xf32>, vector<4x8x8xf32>, vector<4x8x8xf32> -> vector<4x8x8xf32>
    "tpu.trace_stop"() : () -> ()
    %c0_18 = arith.constant 0 : index
    %c0_19 = arith.constant 0 : index
    %c0_20 = arith.constant 0 : index
    %37 = vector.load %arg5[%c0_18, %c0_19, %c0_20] : memref<4x8x32xf32, #tpu.memory_space<vmem>>, vector<4x8x32xf32>
    "tpu.trace_start"() <{level = 10 : i32, message = "gsd,gde->gse"}> : () -> ()
    %cst_21 = arith.constant dense<0.000000e+00> : vector<4x8x32xf32>
    %38 = tpu.matmul %36, %37, %cst_21 {dimension_numbers = #tpu.dot_dimension_numbers<[2], [1], [1], [2], [0, 0, 0, 1, 1, 2], [0], [0]>} : vector<4x8x8xf32>, vector<4x8x32xf32>, vector<4x8x32xf32> -> vector<4x8x32xf32>
    "tpu.trace_stop"() : () -> ()
    %39 = vector.shape_cast %38 : vector<4x8x32xf32> to vector<1x4x8x32xf32>
    %40 = vector.extract_strided_slice %39 {offsets = [0, 0, 0, 0], sizes = [1, 1, 8, 32], strides = [1, 1, 1, 1]} : vector<1x4x8x32xf32> to vector<1x1x8x32xf32>
    %41 = vector.shape_cast %40 : vector<1x1x8x32xf32> to vector<1x8x32xf32>
    %42 = vector.extract_strided_slice %39 {offsets = [0, 1, 0, 0], sizes = [1, 1, 8, 32], strides = [1, 1, 1, 1]} : vector<1x4x8x32xf32> to vector<1x1x8x32xf32>
    %43 = vector.shape_cast %42 : vector<1x1x8x32xf32> to vector<1x8x32xf32>
    %44 = arith.addf %41, %43 : vector<1x8x32xf32>
    %45 = vector.extract_strided_slice %39 {offsets = [0, 2, 0, 0], sizes = [1, 1, 8, 32], strides = [1, 1, 1, 1]} : vector<1x4x8x32xf32> to vector<1x1x8x32xf32>
    %46 = vector.shape_cast %45 : vector<1x1x8x32xf32> to vector<1x8x32xf32>
    %47 = arith.addf %44, %46 : vector<1x8x32xf32>
    %48 = vector.extract_strided_slice %39 {offsets = [0, 3, 0, 0], sizes = [1, 1, 8, 32], strides = [1, 1, 1, 1]} : vector<1x4x8x32xf32> to vector<1x1x8x32xf32>
    %49 = vector.shape_cast %48 : vector<1x1x8x32xf32> to vector<1x8x32xf32>
    %50 = arith.addf %47, %49 : vector<1x8x32xf32>
    %51 = vector.shape_cast %50 : vector<1x8x32xf32> to vector<8x32xf32>
    %c0_22 = arith.constant 0 : index
    %c0_23 = arith.constant 0 : index
    %52 = vector.load %arg6[%c0_22, %c0_23] : memref<1x32xf32, #tpu.memory_space<vmem>>, vector<1x32xf32>
    %53 = vector.broadcast %52 : vector<1x32xf32> to vector<8x32xf32>
    %54 = arith.addf %51, %53 : vector<8x32xf32>
    %55 = arith.addf %1, %54 : vector<8x32xf32>
    %c0_24 = arith.constant 0 : index
    %c0_25 = arith.constant 0 : index
    %56 = vector.load %arg7[%c0_24, %c0_25] : memref<1x32xf32, #tpu.memory_space<vmem>>, vector<1x32xf32>
    %c0_26 = arith.constant 0 : index
    %c0_27 = arith.constant 0 : index
    %57 = vector.load %arg8[%c0_26, %c0_27] : memref<1x32xf32, #tpu.memory_space<vmem>>, vector<1x32xf32>
    %cst_28 = arith.constant dense<0.000000e+00> : vector<8xf32>
    %58 = vector.multi_reduction <add>, %55, %cst_28 [1] : vector<8x32xf32> to vector<8xf32>
    %59 = vector.shape_cast %58 : vector<8xf32> to vector<8x1xf32>
    %cst_29 = arith.constant 3.200000e+01 : f32
    %60 = vector.broadcast %cst_29 : f32 to vector<8x1xf32>
    %61 = arith.divf %59, %60 : vector<8x1xf32>
    %62 = vector.broadcast %61 : vector<8x1xf32> to vector<8x32xf32>
    %63 = arith.subf %55, %62 : vector<8x32xf32>
    %64 = arith.mulf %63, %63 : vector<8x32xf32>
    %cst_30 = arith.constant dense<0.000000e+00> : vector<8xf32>
    %65 = vector.multi_reduction <add>, %64, %cst_30 [1] : vector<8x32xf32> to vector<8xf32>
    %66 = vector.shape_cast %65 : vector<8xf32> to vector<8x1xf32>
    %cst_31 = arith.constant 3.200000e+01 : f32
    %67 = vector.broadcast %cst_31 : f32 to vector<8x1xf32>
    %68 = arith.divf %66, %67 : vector<8x1xf32>
    %cst_32 = arith.constant 9.99999974E-6 : f32
    %69 = vector.broadcast %cst_32 : f32 to vector<8x1xf32>
    %70 = arith.addf %68, %69 : vector<8x1xf32>
    %71 = math.rsqrt %70 : vector<8x1xf32>
    %72 = vector.broadcast %71 : vector<8x1xf32> to vector<8x32xf32>
    %73 = arith.mulf %63, %72 : vector<8x32xf32>
    %74 = vector.broadcast %56 : vector<1x32xf32> to vector<8x32xf32>
    %75 = arith.mulf %73, %74 : vector<8x32xf32>
    %76 = vector.broadcast %57 : vector<1x32xf32> to vector<8x32xf32>
    %77 = arith.addf %75, %76 : vector<8x32xf32>
    %c0_33 = arith.constant 0 : index
    %c0_34 = arith.constant 0 : index
    %78 = vector.load %arg11[%c0_33, %c0_34] : memref<32x64xf32, #tpu.memory_space<vmem>>, vector<32x64xf32>
    %cst_35 = arith.constant dense<0.000000e+00> : vector<8x64xf32>
    %79 = tpu.matmul %77, %78, %cst_35 {dimension_numbers = #tpu.dot_dimension_numbers<[1], [0], [0], [1], [0, 0, 1, 1], [], []>} : vector<8x32xf32>, vector<32x64xf32>, vector<8x64xf32> -> vector<8x64xf32>
    %c0_36 = arith.constant 0 : index
    %c0_37 = arith.constant 0 : index
    %80 = vector.load %arg12[%c0_36, %c0_37] : memref<1x64xf32, #tpu.memory_space<vmem>>, vector<1x64xf32>
    %81 = vector.broadcast %80 : vector<1x64xf32> to vector<8x64xf32>
    %82 = arith.addf %79, %81 : vector<8x64xf32>
    %cst_38 = arith.constant 0.000000e+00 : f32
    %83 = vector.broadcast %cst_38 : f32 to vector<8x64xf32>
    %84 = arith.maximumf %82, %83 : vector<8x64xf32>
    %c0_39 = arith.constant 0 : index
    %c0_40 = arith.constant 0 : index
    %85 = vector.load %arg13[%c0_39, %c0_40] : memref<64x32xf32, #tpu.memory_space<vmem>>, vector<64x32xf32>
    %cst_41 = arith.constant dense<0.000000e+00> : vector<8x32xf32>
    %86 = tpu.matmul %84, %85, %cst_41 {dimension_numbers = #tpu.dot_dimension_numbers<[1], [0], [0], [1], [0, 0, 1, 1], [], []>} : vector<8x64xf32>, vector<64x32xf32>, vector<8x32xf32> -> vector<8x32xf32>
    %c0_42 = arith.constant 0 : index
    %c0_43 = arith.constant 0 : index
    %87 = vector.load %arg14[%c0_42, %c0_43] : memref<1x32xf32, #tpu.memory_space<vmem>>, vector<1x32xf32>
    %88 = vector.broadcast %87 : vector<1x32xf32> to vector<8x32xf32>
    %89 = arith.addf %86, %88 : vector<8x32xf32>
    %90 = arith.addf %77, %89 : vector<8x32xf32>
    %c0_44 = arith.constant 0 : index
    %c0_45 = arith.constant 0 : index
    %91 = vector.load %arg9[%c0_44, %c0_45] : memref<1x32xf32, #tpu.memory_space<vmem>>, vector<1x32xf32>
    %c0_46 = arith.constant 0 : index
    %c0_47 = arith.constant 0 : index
    %92 = vector.load %arg10[%c0_46, %c0_47] : memref<1x32xf32, #tpu.memory_space<vmem>>, vector<1x32xf32>
    %cst_48 = arith.constant dense<0.000000e+00> : vector<8xf32>
    %93 = vector.multi_reduction <add>, %90, %cst_48 [1] : vector<8x32xf32> to vector<8xf32>
    %94 = vector.shape_cast %93 : vector<8xf32> to vector<8x1xf32>
    %cst_49 = arith.constant 3.200000e+01 : f32
    %95 = vector.broadcast %cst_49 : f32 to vector<8x1xf32>
    %96 = arith.divf %94, %95 : vector<8x1xf32>
    %97 = vector.broadcast %96 : vector<8x1xf32> to vector<8x32xf32>
    %98 = arith.subf %90, %97 : vector<8x32xf32>
    %99 = arith.mulf %98, %98 : vector<8x32xf32>
    %cst_50 = arith.constant dense<0.000000e+00> : vector<8xf32>
    %100 = vector.multi_reduction <add>, %99, %cst_50 [1] : vector<8x32xf32> to vector<8xf32>
    %101 = vector.shape_cast %100 : vector<8xf32> to vector<8x1xf32>
    %cst_51 = arith.constant 3.200000e+01 : f32
    %102 = vector.broadcast %cst_51 : f32 to vector<8x1xf32>
    %103 = arith.divf %101, %102 : vector<8x1xf32>
    %cst_52 = arith.constant 9.99999974E-6 : f32
    %104 = vector.broadcast %cst_52 : f32 to vector<8x1xf32>
    %105 = arith.addf %103, %104 : vector<8x1xf32>
    %106 = math.rsqrt %105 : vector<8x1xf32>
    %107 = vector.broadcast %106 : vector<8x1xf32> to vector<8x32xf32>
    %108 = arith.mulf %98, %107 : vector<8x32xf32>
    %109 = vector.broadcast %91 : vector<1x32xf32> to vector<8x32xf32>
    %110 = arith.mulf %108, %109 : vector<8x32xf32>
    %111 = vector.broadcast %92 : vector<1x32xf32> to vector<8x32xf32>
    %112 = arith.addf %110, %111 : vector<8x32xf32>
    %113 = vector.shape_cast %112 : vector<8x32xf32> to vector<1x8x32xf32>
    %c0_53 = arith.constant 0 : index
    %c0_54 = arith.constant 0 : index
    %c0_55 = arith.constant 0 : index
    %114 = vector.load %arg15[%c0_53, %c0_54, %c0_55] : memref<1x8x32xf32, #tpu.memory_space<vmem>>, vector<1x8x32xf32>
    tpu.vector_store %arg15[%c0_53, %c0_54, %c0_55], %113 {strides = array<i32>} : memref<1x8x32xf32, #tpu.memory_space<vmem>>, vector<1x8x32xf32>,
    return
  }
  func.func @transform_0(%arg0: i32) -> (i32, i32, i32) {
    %c0_i32 = arith.constant 0 : i32
    %c0_i32_0 = arith.constant 0 : i32
    %c0_i32_1 = arith.constant 0 : i32
    return %arg0, %c0_i32, %c0_i32_0 : i32, i32, i32
  }
  func.func @transform_1(%arg0: i32) -> (i32, i32) {
    %c0_i32 = arith.constant 0 : i32
    %c0_i32_0 = arith.constant 0 : i32
    %c0_i32_1 = arith.constant 0 : i32
    return %c0_i32, %c0_i32_0 : i32, i32
  }
  func.func @transform_2(%arg0: i32) -> (i32, i32, i32) {
    %c0_i32 = arith.constant 0 : i32
    %c0_i32_0 = arith.constant 0 : i32
    %c0_i32_1 = arith.constant 0 : i32
    %c0_i32_2 = arith.constant 0 : i32
    return %c0_i32, %c0_i32_0, %c0_i32_1 : i32, i32, i32
  }
  func.func @transform_3(%arg0: i32) -> (i32, i32, i32) {
    %c0_i32 = arith.constant 0 : i32
    %c0_i32_0 = arith.constant 0 : i32
    %c0_i32_1 = arith.constant 0 : i32
    %c0_i32_2 = arith.constant 0 : i32
    return %c0_i32, %c0_i32_0, %c0_i32_1 : i32, i32, i32
  }
  func.func @transform_4(%arg0: i32) -> (i32, i32, i32) {
    %c0_i32 = arith.constant 0 : i32
    %c0_i32_0 = arith.constant 0 : i32
    %c0_i32_1 = arith.constant 0 : i32
    %c0_i32_2 = arith.constant 0 : i32
    return %c0_i32, %c0_i32_0, %c0_i32_1 : i32, i32, i32
  }
  func.func @transform_5(%arg0: i32) -> (i32, i32) {
    %c0_i32 = arith.constant 0 : i32
    %c0_i32_0 = arith.constant 0 : i32
    %c0_i32_1 = arith.constant 0 : i32
    return %c0_i32, %c0_i32_0 : i32, i32
  }
  func.func @transform_6(%arg0: i32) -> (i32, i32) {
    %c0_i32 = arith.constant 0 : i32
    %c0_i32_0 = arith.constant 0 : i32
    %c0_i32_1 = arith.constant 0 : i32
    return %c0_i32, %c0_i32_0 : i32, i32
  }
  func.func @transform_7(%arg0: i32) -> (i32, i32) {
    %c0_i32 = arith.constant 0 : i32
    %c0_i32_0 = arith.constant 0 : i32
    %c0_i32_1 = arith.constant 0 : i32
    return %c0_i32, %c0_i32_0 : i32, i32
  }
  func.func @transform_8(%arg0: i32) -> (i32, i32) {
    %c0_i32 = arith.constant 0 : i32
    %c0_i32_0 = arith.constant 0 : i32
    %c0_i32_1 = arith.constant 0 : i32
    return %c0_i32, %c0_i32_0 : i32, i32
  }
  func.func @transform_9(%arg0: i32) -> (i32, i32) {
    %c0_i32 = arith.constant 0 : i32
    %c0_i32_0 = arith.constant 0 : i32
    %c0_i32_1 = arith.constant 0 : i32
    return %c0_i32, %c0_i32_0 : i32, i32
  }
  func.func @transform_10(%arg0: i32) -> (i32, i32) {
    %c0_i32 = arith.constant 0 : i32
    %c0_i32_0 = arith.constant 0 : i32
    %c0_i32_1 = arith.constant 0 : i32
    return %c0_i32, %c0_i32_0 : i32, i32
  }
  func.func @transform_11(%arg0: i32) -> (i32, i32) {
    %c0_i32 = arith.constant 0 : i32
    %c0_i32_0 = arith.constant 0 : i32
    %c0_i32_1 = arith.constant 0 : i32
    return %c0_i32, %c0_i32_0 : i32, i32
  }
  func.func @transform_12(%arg0: i32) -> (i32, i32) {
    %c0_i32 = arith.constant 0 : i32
    %c0_i32_0 = arith.constant 0 : i32
    %c0_i32_1 = arith.constant 0 : i32
    return %c0_i32, %c0_i32_0 : i32, i32
  }
  func.func @transform_13(%arg0: i32) -> (i32, i32) {
    %c0_i32 = arith.constant 0 : i32
    %c0_i32_0 = arith.constant 0 : i32
    %c0_i32_1 = arith.constant 0 : i32
    return %c0_i32, %c0_i32_0 : i32, i32
  }
  func.func @transform_14(%arg0: i32) -> (i32, i32, i32) {
    %c0_i32 = arith.constant 0 : i32
    %c0_i32_0 = arith.constant 0 : i32
    %c0_i32_1 = arith.constant 0 : i32
    return %arg0, %c0_i32, %c0_i32_0 : i32, i32, i32
  }
}

</mosaic_0001>

<bundles_post_ra>
// kernel: tpu_custom_call.1
= control target key start
LH: loop header
LB: loop body
LE: loop exit
PB: predicated region body
PF: predicated region fallthrough
CT: control target
= control target key end

     0   :  { %s2877_s0 = inlined_call_operand.vmem [shape: f32[2,8,32], index: 0, kind: input, shape index: {}]   ;;  %s2878_s1 = inlined_call_operand.vmem [shape: f32[8,8], index: 1, kind: input, shape index: {}]   ;;  %s2879_s2 = inlined_call_operand.vmem [shape: f32[4,32,24], index: 2, kind: input, shape index: {}]   ;;  %s2880_s3 = inlined_call_operand.vmem [shape: f32[4,1,24], index: 3, kind: input, shape index: {}]   ;;  %s2881_s4 = inlined_call_operand.vmem [shape: f32[4,8,32], index: 4, kind: input, shape index: {}]   ;;  %s2882_s5 = inlined_call_operand.vmem [shape: f32[1,32], index: 5, kind: input, shape index: {}]   ;;  %s2883_s6 = inlined_call_operand.vmem [shape: f32[1,32], index: 6, kind: input, shape index: {}]   ;;  %s2884_s7 = inlined_call_operand.vmem [shape: f32[1,32], index: 7, kind: input, shape index: {}]   ;;  %s2885_s8 = inlined_call_operand.vmem [shape: f32[1,32], index: 8, kind: input, shape index: {}]   ;;  %s2886_s9 = inlined_call_operand.vmem [shape: f32[1,32], index: 9, kind: input, shape index: {}]   ;;  %s2887_s10 = inlined_call_operand.vmem [shape: f32[32,64], index: 10, kind: input, shape index: {}]   ;;  %s2888_s11 = inlined_call_operand.vmem [shape: f32[1,64], index: 11, kind: input, shape index: {}]   ;;  %s2889_s12 = inlined_call_operand.vmem [shape: f32[64,32], index: 12, kind: input, shape index: {}]   ;;  %s2890_s13 = inlined_call_operand.vmem [shape: f32[1,32], index: 13, kind: input, shape index: {}]   ;;  %s2891_s14 = inlined_call_operand.hbm [shape: f32[2,8,32], index: 14, kind: output, shape index: {}]  }
   0x1   :  { %2895 = sst [smem:[#allocation8_spill]] %s2877_s0 }
   0x2   :  { %2896 = sst [smem:[#allocation9_spill]] %s2878_s1 }
   0x3   :  { %2897 = sst [smem:[#allocation10_spill]] %s2879_s2 }
   0x4   :  { %19 = vsyncpa [#allocation3], 0 }
   0x5   :  { %21 = vsyncpa [#allocation3 + $0x1], 0  ;;  %s2516_s29 = smov 0   ;;  %s2518_s30 = smov 0  }
   0x6   :  { %s2520_s15 = smov 0   ;;  %s2522_s16 = smov 0  }
   0x7 LB: > { %2898 = sst [smem:[#allocation5_spill]] %s2430_s15  ;;  %s2537_s17 = sadd.s32 4294967295, %s2434_s16   ;;  %s2434_s16 = sphi %s2522_s16, %s2906_s16   ;;  %s2430_s15 = sphi %s2520_s15, %s2908_s15   ;;  %s2426_s30 = sphi %s2518_s30, %s2910_s30   ;;  %s2422_s29 = sphi %s2516_s29, %s2909_s29  }
   0x8   : > { %s2076_s18 = sadd.s32 4294967294, %s2434_s16   ;;  %s2541_s19 = sadd.s32 1, %s2434_s16  }
   0x9   : > { %2899 = sst [smem:[#allocation6_spill]] %s2541_s19  ;;  %s333_s20 = sadd.s32 1, %s2430_s15 }
   0xa   : > { %s330_s21 = ssub.s32 %s2434_s16, %s2541_s19  ;;  %p343_p0 = scmp.ne.s32.totalorder %s2430_s15, %s2426_s30 }
   0xb   : > { %p331_p1 = scmp.eq.s32.totalorder %s330_s21, 0  ;;  %p344_p2 = scmp.eq.s32.totalorder %s2537_s17, 1 }
   0xc   : > { %p349_p3 = scmp.ne.s32.totalorder %s2426_s30, %s2422_s29  ;;  %p350_p4 = scmp.eq.s32.totalorder %s2076_s18, 1 }
   0xd   : > { %s2552_s22 = scalar_select %p331_p1, %s2430_s15, %s333_s20  }
   0xe   : > { %p2554_p5 = por %p344_p2, %p343_p0  ;;  %p2558_p6 = por %p350_p4, %p349_p3 }
   0xf   : > { %2900 = sst [smem:[#allocation7_spill]] %s2552_s22  ;;  %p2079_p7 = scmp.ge.s32.totalorder %s2434_s16, 1 }
  0x10   : > { %p414_p8 = scmp.lt.s32.totalorder %s2434_s16, 3 }
  0x12   : > { %p415_p9 = pnand %p2079_p7, %p414_p8 }
  0x13   : > { %s2903_s2 = sld [smem:[#allocation10_spill]] (!%p415_p9)  ;;  %p459_p10 = scmp.lt.s32.totalorder (!%p415_p9), %s2537_s17, 1 }
  0x14   : > { %418 = sbr.rel (%p415_p9) target bundleno = 2282 (0x8ea), region = 76  ;;  %s2904_s0 = sld [smem:[#allocation8_spill]] (!%p415_p9) }
  0x15   : > { %s2438_s15 = smov (!%p415_p9), 120   ;;  %s2905_s1 = sld [smem:[#allocation9_spill]] (!%p415_p9) }
  0x16   : > { %s2116_s21 = sshll.u32 (!%p415_p9), %s2537_s17, 7  ;;  %s2440_s18 = smov (!%p415_p9), [#allocation2]  }
  0x19   : > { %v467_v0 = vld [vmem:[%s2903_s2 + $0x18] sm:$0xff]  ;;  %v2436_v2 = vmov 0.0   ;;  %v466_v3 = vld [vmem:[%s2903_s2 + $0x10] sm:$0xff]  ;;  %s460_s25 = scalar_select %p459_p10, %s2537_s17, 1  ;;  %v465_v5 = vld [vmem:[%s2903_s2 + $0x8] sm:$0xff]  ;;  %vm2437_vm0 = vmmov 0  }
  0x1a   : > { %v471_v1 = vld [vmem:[%s2903_s2 + $0x38] sm:$0xff]  ;;  %2177 = vmatprep.subr.mxu0 %v2436_v2  ;;  %2188 = vmatprep.subr.mxu1 %v2436_v2  ;;  %v470_v4 = vld [vmem:[%s2903_s2 + $0x30] sm:$0xff]  ;;  %v469_v6 = vld [vmem:[%s2903_s2 + $0x28] sm:$0xff]  ;;  %vm508_vm1 = vcmask 261120   ;;  %vm802_vm2 = vcmask 64512   ;;  %vm1898_vm4 = vcmask 523264  }
  0x1b   : > { %2178 = vmatpush3.msra.mxu0 %v467_v0  ;;  %2189 = vmatpush3.msra.mxu1 %v471_v1  ;;  %s2081_s20 = sshll.u32 %s460_s25, 3  ;;  %v464_v7 = vld [vmem:[%s2903_s2] sm:$0xff]  ;;  %v475_v10 = vld [vmem:[%s2903_s2 + $0x58] sm:$0xff]  ;;  %v474_v11 = vld [vmem:[%s2903_s2 + $0x50] sm:$0xff] }
  0x1c   : > { %2179 = vmatprep.subr.mxu0 %v2436_v2  ;;  %2190 = vmatprep.subr.mxu1 %v2436_v2  ;;  %s462_s26 = scalar_lea.vmem %s2904_s0, %s2081_s20  ;;  %v468_v9 = vld [vmem:[%s2903_s2 + $0x20] sm:$0xff]  ;;  %v479_v12 = vld [vmem:[%s2903_s2 + $0x78] sm:$0xff]  ;;  %v473_v13 = vld [vmem:[%s2903_s2 + $0x48] sm:$0xff]  ;;  %s2378_s20 = sshll.u32 %s2440_s18, 4  ;;  %s2379_s20 = int_to_ptr.vmem [resolvable:$false] %s2378_s20 }
  0x1d   : > { %2180 = vmatpush3.msra.mxu0 %v466_v3  ;;  %2191 = vmatpush3.msra.mxu1 %v470_v4  ;;  %v2598_v8 = vld [vmem:[%s462_s26] sm:$0xff]  ;;  %v478_v14 = vld [vmem:[%s2903_s2 + $0x70] sm:$0xff]  ;;  %v477_v16 = vld [vmem:[%s2903_s2 + $0x68] sm:$0xff]  ;;  %s2439_s26 = smov 112   ;;  %s2380_s17 = scalar_lea.vmem %s2379_s20, 256 }
  0x1e   : > { %2181 = vmatprep.subr.mxu0 %v2436_v2  ;;  %2192 = vmatprep.subr.mxu1 %v2436_v2  ;;  %v472_v15 = vld [vmem:[%s2903_s2 + $0x40] sm:$0xff] }
  0x1f   : > { %2182 = vmatpush3.msra.mxu0 %v465_v5  ;;  %2185 = vmatprep.mubr.msk.f32.mxu0 %vm2437_vm0, %v2436_v2  ;;  %v476_v17 = vld [vmem:[%s2903_s2 + $0x60] sm:$0xff] }
  0x20   : > { %2183 = vmatprep.subr.mxu0 %v2436_v2  ;;  %2193 = vmatpush3.msra.mxu1 %v469_v6  ;;  %v2082_v18 = vld [vmem:[%s2880_s3] ss:$0 sm:$0xff]  ;;  %v2083_v20 = vld [vmem:[%s2880_s3 + $0x1] ss:$0 sm:$0xff]  ;;  %v2084_v26 = vld [vmem:[%s2880_s3 + $0x2] ss:$0 sm:$0xff] }
  0x21   : > { %2184 = vmatpush3.msra.mxu0 %v464_v7  ;;  %2194 = vmatprep.subr.mxu1 %v2436_v2  ;;  %v2085_v29 = vld [vmem:[%s2880_s3 + $0x3] ss:$0 sm:$0xff] }
  0x22   : > { %2186 = vmatmul.mubr.msk.f32.vlgmr.msra.gmra.mxu0 %vm508_vm1, %v2598_v8  ;;  %2199 = vmatprep.subr.mxu0 %v2436_v2  ;;  %v796_v42 = vld [vmem:[%s2905_s1] sm:$0xff]  ;;  %s2015_s1 = scalar_lea.hbm %s2891_s14, %s2116_s21 }
  0x23   : > { %2195 = vmatpush3.msra.mxu1 %v468_v9  ;;  %2196 = vmatprep.mubr.msk.f32.mxu1 %vm2437_vm0, %v2436_v2  ;;  %vm797_vm3 = vcmp.eq.f32.partialorder %v796_v42, 0.0 }
  0x24   : > { %2200 = vmatpush3.msra.mxu0 %v475_v10  ;;  %2197 = vmatmul.mubr.msk.f32.vlgmr.msra.gmra.mxu1 %vm508_vm1, %v2598_v8  ;;  %v798_v43 = vsel %vm797_vm3, -1e+09, %v2436_v2 }
  0x25   : > { %2201 = vmatprep.subr.mxu0 %v2436_v2  ;;  %2210 = vmatprep.subr.mxu1 %v2436_v2 }
  0x26   : > { %2202 = vmatpush3.msra.mxu0 %v474_v11  ;;  %2211 = vmatpush3.msra.mxu1 %v479_v12 }
  0x27   : > { %2203 = vmatprep.subr.mxu0 %v2436_v2  ;;  %2212 = vmatprep.subr.mxu1 %v2436_v2 }
  0x28   : > { %2204 = vmatpush3.msra.mxu0 %v473_v13  ;;  %2213 = vmatpush3.msra.mxu1 %v478_v14 }
  0x29   : > { %2205 = vmatprep.subr.mxu0 %v2436_v2  ;;  %2214 = vmatprep.subr.mxu1 %v2436_v2 }
  0x2a   : > { %2206 = vmatpush3.msra.mxu0 %v472_v15  ;;  %2207 = vmatprep.mubr.msk.f32.mxu0 %vm2437_vm0, %v2436_v2 }
  0x2b   : > { %2215 = vmatpush3.msra.mxu1 %v477_v16  ;;  %2208 = vmatmul.mubr.msk.f32.vlgmr.msra.gmra.mxu0 %vm508_vm1, %v2598_v8 }
  0x2c   : > { %2216 = vmatprep.subr.mxu1 %v2436_v2  ;;  %2218 = vmatprep.mubr.msk.f32.mxu1 %vm2437_vm0, %v2436_v2 }
  0x2d   : > { %2217 = vmatpush3.msra.mxu1 %v476_v17  ;;  %2221 = vmatprep.subr.mxu0 %v2436_v2 }
  0x2e   : > { %2219 = vmatmul.mubr.msk.f32.vlgmr.msra.gmra.mxu1 %vm508_vm1, %v2598_v8  ;;  %2223 = vmatprep.mubr.msk.f32.mxu0 %vm2437_vm0, %v2436_v2 }
  0x2f   : > { %2236 = vmatprep.subr.mxu1 %v2436_v2  ;;  %2238 = vmatprep.mubr.msk.f32.mxu1 %vm2437_vm0, %v2436_v2 }
  0xe2   : > { %v578_v19 = vpop.f32.mrf.mxu0 }
  0xe3   : > { %v2663_v21 = vadd.f32 %v2082_v18, %v578_v19 }
  0xe4   : > { %v2187_v22 = vpop.f32.mrf.mxu0  ;;  %v648_v23 = vpop.f32.mrf.mxu1 }
  0xe5   : > { %v2665_v24 = vadd.f32 %v2083_v20, %v648_v23  ;;  %800 = vrot.lane.b32.xlu0 %v2663_v21, %s2438_s15  ;;  %v792_v35 = vmul.f32 0.35355338, %v2663_v21 }
  0xe6   : > { %v2198_v25 = vpop.f32.mrf.mxu1 }
  0xe7   : > { %v793_v37 = vmul.f32 0.35355338, %v2665_v24 }
  0xe9   : > { %879 = vrot.lane.b32.xlu0 %v2665_v24, %s2438_s15 }
  0xeb   : > { %v718_v27 = vpop.f32.mrf.mxu0 }
  0xec   : > { %v2672_v28 = vadd.f32 %v2084_v26, %v718_v27 }
  0xed   : > { %v2209_v30 = vpop.f32.mrf.mxu0 }
  0xee   : > { %v788_v31 = vpop.f32.mrf.mxu1  ;;  %957 = vrot.lane.b32.xlu1 %v2672_v28, %s2438_s15  ;;  %v794_v39 = vmul.f32 0.35355338, %v2672_v28 }
  0xef   : > { %v2678_v32 = vadd.f32 %v2085_v29, %v788_v31 }
  0xf0   : > { %v2220_v33 = vpop.f32.mrf.mxu1 }
  0xf1   : > { %v795_v41 = vmul.f32 0.35355338, %v2678_v32 }
  0xf2   : > { %1035 = vrot.lane.b32.xlu1 %v2678_v32, %s2438_s15  ;;  %s456_s15 = sand.u32 1, %s2426_s30  }
  0xf3   : > { %s2080_s19 = sshll.u32 %s456_s15, 3  ;;  %s2004_s2 = scalar_lea.sflag [#allocation3], %s456_s15 }
 0x157   : > { %v801_v34 = vpop.permute.xlu0 %800 }
 0x158   : > { %2222 = vmatpush3.xpose.msk.msra.mxu0 %vm802_vm2, %v801_v34  ;;  %v1460_v34 = vld [vmem:[%s2881_s4] sm:$0xff] }
 0x159   : > { %2226 = vmatprep.subr.mxu0 %v2436_v2 }
 0x15b   : > { %v880_v36 = vpop.permute.xlu0 %879  ;;  %2224 = vmatmul.mubr.msk.f32.vlgmr.msra.gmra.mxu0 %vm802_vm2, %v792_v35  ;;  %v1461_v35 = vld [vmem:[%s2881_s4 + $0x8] sm:$0xff] }
 0x15c   : > { %2227 = vmatpush3.xpose.msk.msra.mxu0 %vm802_vm2, %v880_v36  ;;  %2228 = vmatprep.mubr.msk.f32.mxu0 %vm2437_vm0, %v2436_v2  ;;  %v1462_v36 = vld [vmem:[%s2881_s4 + $0x10] sm:$0xff] }
 0x15d   : > { %2231 = vmatprep.subr.mxu0 %v2436_v2 }
 0x15f   : > { %2229 = vmatmul.mubr.msk.f32.vlgmr.msra.gmra.mxu0 %vm802_vm2, %v793_v37 }
 0x160   : > { %v958_v38 = vpop.permute.xlu1 %957  ;;  %2233 = vmatprep.mubr.msk.f32.mxu0 %vm2437_vm0, %v2436_v2 }
 0x161   : > { %2232 = vmatpush3.xpose.msk.msra.mxu0 %vm802_vm2, %v958_v38 }
 0x162   : > { %2241 = vmatprep.subr.mxu0 %v2436_v2 }
 0x164   : > { %v1036_v40 = vpop.permute.xlu1 %1035  ;;  %2234 = vmatmul.mubr.msk.f32.vlgmr.msra.gmra.mxu0 %vm802_vm2, %v794_v39  ;;  %v1463_v39 = vld [vmem:[%s2881_s4 + $0x18] sm:$0xff] }
 0x165   : > { %2237 = vmatpush3.xpose.msk.msra.mxu1 %vm802_vm2, %v1036_v40  ;;  %2243 = vmatprep.mubr.msk.f32.mxu0 %vm2437_vm0, %v2436_v2 }
 0x166   : > { %2246 = vmatprep.subr.mxu1 %v2436_v2 }
 0x168   : > { %2239 = vmatmul.mubr.msk.f32.vlgmr.msra.gmra.mxu1 %vm802_vm2, %v795_v41 }
 0x169   : > { %2248 = vmatprep.mubr.msk.f32.mxu1 %vm2437_vm0, %v2436_v2 }
 0x21b   : > { %v874_v44 = vpop.f32.mrf.mxu0 }
 0x21c   : > { %v875_v45 = vadd.f32 %v874_v44, %v798_v43 }
 0x21d   : > { %v2225_v46 = vpop.f32.mrf.mxu0 }
 0x21e   : > { %v1112_v47 = vsel %vm802_vm2, %v875_v45, -inf }
 0x21f   : > { %1113 = vmax.xlane.f32.xlu0 %v1112_v47  ;;  %v952_v48 = vpop.f32.mrf.mxu0 }
 0x220   : > { %v953_v49 = vadd.f32 %v952_v48, %v798_v43 }
 0x221   : > { %v2230_v50 = vpop.f32.mrf.mxu0 }
 0x222   : > { %v1115_v51 = vsel %vm802_vm2, %v953_v49, -inf }
 0x223   : > { %1116 = vmax.xlane.f32.xlu1 %v1115_v51 }
 0x224   : > { %v1030_v52 = vpop.f32.mrf.mxu0 }
 0x225   : > { %v1031_v53 = vadd.f32 %v1030_v52, %v798_v43 }
 0x226   : > { %v2235_v54 = vpop.f32.mrf.mxu0 }
 0x227   : > { %v1118_v55 = vsel %vm802_vm2, %v1031_v53, -inf }
 0x228   : > { %v1108_v56 = vpop.f32.mrf.mxu1  ;;  %1119 = vmax.xlane.f32.xlu0 %v1118_v55  ;;  %v2106_v55 = vld [vmem:[%s2882_s5] ss:$0 sm:$0xff] }
 0x229   : > { %v1109_v57 = vadd.f32 %v1108_v56, %v798_v43 }
 0x22a   : > { %v2240_v58 = vpop.f32.mrf.mxu1 }
 0x22b   : > { %v1121_v59 = vsel %vm802_vm2, %v1109_v57, -inf }
 0x22c   : > { %1122 = vmax.xlane.f32.xlu0 %v1121_v59 }
 0x234   : > { %1156 = vrot.lane.b32.xlu1 %v2663_v21, %s2439_s26 }
 0x2a8   : > { %v1114_v60 = vpop.xlane.xlu0 %1113 }
 0x2a9   : > { %v1124_v61 = vsub.f32 %v875_v45, %v1114_v60 }
 0x2ab   : > { %v1128_v62 = vmul.f32 1.442695, %v1124_v61 }
 0x2ac   : > { %v1117_v63 = vpop.xlane.xlu1 %1116 }
 0x2ad   : > { %2354 = vpow2.f32 %v1128_v62  ;;  %v1125_v0 = vsub.f32 %v953_v49, %v1117_v63 }
 0x2af   : > { %v1130_v1 = vmul.f32 1.442695, %v1125_v0 }
 0x2b0   : > { %v1157_v3 = vpop.permute.xlu1 %1156 }
 0x2b1   : > { %2356 = vpow2.f32 %v1130_v1  ;;  %v1120_v4 = vpop.xlane.xlu0 %1119  ;;  %2242 = vmatpush3.msra.mxu0 %v1157_v3  ;;  %v1801_v3 = vld [vmem:[%s2887_s10 + $0x18] sm:$0xff] }
 0x2b2   : > { %v1126_v5 = vsub.f32 %v1031_v53, %v1120_v4  ;;  %2251 = vmatprep.subr.mxu0 %v2436_v2  ;;  %v1800_v4 = vld [vmem:[%s2887_s10 + $0x10] sm:$0xff] }
 0x2b4   : > { %v1132_v6 = vmul.f32 1.442695, %v1126_v5  ;;  %v1798_v5 = vld [vmem:[%s2887_s10] sm:$0xff] }
 0x2b5   : > { %v1123_v7 = vpop.xlane.xlu0 %1122 }
 0x2b6   : > { %2358 = vpow2.f32 %v1132_v6  ;;  %v1127_v9 = vsub.f32 %v1109_v57, %v1123_v7  ;;  %v1890_v6 = vld [vmem:[%s2889_s12 + $0x38] sm:$0xff]  ;;  %v1889_v7 = vld [vmem:[%s2889_s12 + $0x30] sm:$0xff] }
 0x2b8   : > { %v1134_v10 = vmul.f32 1.442695, %v1127_v9  ;;  %v1888_v9 = vld [vmem:[%s2889_s12 + $0x28] sm:$0xff] }
 0x2ba   : > { %v2355_v11 = vpop.eup %2354  ;;  %2360 = vpow2.f32 %v1134_v10  ;;  %v1887_v10 = vld [vmem:[%s2889_s12 + $0x20] sm:$0xff] }
 0x2bb   : > { %v1136_v12 = vsel %vm802_vm2, %v2355_v11, 0.0 }
 0x2bc   : > { %1137 = vadd.xlane.f32.xlu1 %v1136_v12 }
 0x2be   : > { %v2357_v13 = vpop.eup %2356 }
 0x2bf   : > { %v1139_v14 = vsel %vm802_vm2, %v2357_v13, 0.0 }
 0x2c0   : > { %1140 = vadd.xlane.f32.xlu0 %v1139_v14 }
 0x2c3   : > { %v2359_v15 = vpop.eup %2358 }
 0x2c4   : > { %v1142_v16 = vsel %vm802_vm2, %v2359_v15, 0.0 }
 0x2c5   : > { %1143 = vadd.xlane.f32.xlu1 %v1142_v16  ;;  %v2107_v16 = vld [vmem:[%s2883_s6] ss:$0 sm:$0xff] }
 0x2c7   : > { %v2361_v17 = vpop.eup %2360 }
 0x2c8   : > { %v1145_v18 = vsel %vm802_vm2, %v2361_v17, 0.0 }
 0x2c9   : > { %1146 = vadd.xlane.f32.xlu0 %v1145_v18  ;;  %v2108_v18 = vld [vmem:[%s2884_s7] ss:$0 sm:$0xff] }
 0x2d6   : > { %1308 = vrot.lane.b32.xlu1 %v2672_v28, %s2439_s26 }
 0x2da   : > { %1384 = vrot.lane.b32.xlu1 %v2678_v32, %s2439_s26 }
 0x2df   : > { %1232 = vrot.lane.b32.xlu0 %v2665_v24, %s2439_s26  ;;  %s458_s26 = scalar_lea.vmem [#allocation2], %s2080_s19 }
 0x2e0   : > { %s2017_s25 = sshll.u32 %s458_s26, 4  ;;  %s2018_s25 = int_to_ptr.vmem [resolvable:$true] %s2017_s25 }
 0x2e1   : > { %s2374_s28 = scalar_lea.vmem %s2018_s25, 128  ;;  %p2381_p0 = scmp.lt.s32.totalorder %s2018_s25, %s2379_s20 }
 0x2e2   : > { %p2375_p11 = scmp.ne.s32.totalorder %s2018_s25, %s2374_s28  ;;  %p2382_p1 = scmp.lt.s32.totalorder %s2380_s17, %s2374_s28 }
 0x2e4   : > { %p2376_p12 = pnand %p2375_p11, %p2554_p5  ;;  %p2383_p2 = por %p2382_p1, %p2381_p0 }
 0x2e6   : > { %p2377_p13 = pneg %p2376_p12 }
 0x2e8   : > { %p2384_p3 = pnand %p2383_p2, %p2377_p13 }
 0x345   : > { %v1138_v19 = vpop.xlane.xlu1 %1137 }
 0x346   : > { %2362 = vrcp.f32 %v1138_v19 }
 0x349   : > { %v1141_v20 = vpop.xlane.xlu0 %1140 }
 0x34a   : > { %2364 = vrcp.f32 %v1141_v20 }
 0x34e   : > { %v1144_v21 = vpop.xlane.xlu1 %1143 }
 0x34f   : > { %2366 = vrcp.f32 %v1144_v21  ;;  %v1885_v21 = vld [vmem:[%s2889_s12 + $0x10] sm:$0xff] }
 0x352   : > { %v1147_v22 = vpop.xlane.xlu0 %1146  ;;  %v1309_v25 = vpop.permute.xlu1 %1308 }
 0x353   : > { %v2363_v23 = vpop.eup %2362  ;;  %2368 = vrcp.f32 %v1147_v22  ;;  %v1884_v22 = vld [vmem:[%s2889_s12 + $0x8] sm:$0xff] }
 0x354   : > { %v1152_v26 = vmul.f32 %v2363_v23, %v2355_v11  ;;  %v1886_v11 = vld [vmem:[%s2889_s12 + $0x18] sm:$0xff]  ;;  %v1883_v23 = vld [vmem:[%s2889_s12] sm:$0xff] }
 0x356   : > { %v1233_v27 = vpop.permute.xlu0 %1232  ;;  %2244 = vmatmul.mubr.msk.f32.vlgmr.msra.gmra.mxu0 %vm802_vm2, %v1152_v26  ;;  %v1385_v29 = vpop.permute.xlu1 %1384 }
 0x357   : > { %v2365_v28 = vpop.eup %2364  ;;  %2247 = vmatpush3.msra.mxu1 %v1233_v27  ;;  %2252 = vmatpush3.msra.mxu0 %v1309_v25  ;;  %v2109_v25 = vld [vmem:[%s2888_s11] ss:$0 sm:$0xff] }
 0x358   : > { %2256 = vmatprep.subr.mxu1 %v2436_v2  ;;  %v1153_v24 = vmul.f32 %v2365_v28, %v2357_v13  ;;  %2253 = vmatprep.mubr.msk.f32.mxu0 %vm2437_vm0, %v2436_v2 }
 0x359   : > { %2261 = vmatprep.subr.mxu0 %v2436_v2 }
 0x35a   : > { %2249 = vmatmul.mubr.msk.f32.vlgmr.msra.gmra.mxu1 %vm802_vm2, %v1153_v24 }
 0x35b   : > { %2257 = vmatpush3.msra.mxu1 %v1385_v29  ;;  %2258 = vmatprep.mubr.msk.f32.mxu1 %vm2437_vm0, %v2436_v2  ;;  %v2111_v29 = vld [vmem:[%s2890_s13] ss:$0 sm:$0xff] }
 0x35c   : > { %v2367_v30 = vpop.eup %2366  ;;  %2266 = vmatprep.subr.mxu1 %v2436_v2 }
 0x35d   : > { %v1154_v31 = vmul.f32 %v2367_v30, %v2359_v15 }
 0x35f   : > { %2254 = vmatmul.mubr.msk.f32.vlgmr.msra.gmra.mxu0 %vm802_vm2, %v1154_v31 }
 0x360   : > { %v2369_v32 = vpop.eup %2368  ;;  %2263 = vmatprep.mubr.msk.f32.mxu0 %vm2437_vm0, %v2436_v2  ;;  %2262 = vmatpush3.msra.mxu0 %v1460_v34 }
 0x361   : > { %v1155_v33 = vmul.f32 %v2369_v32, %v2361_v17  ;;  %2271 = vmatprep.subr.mxu0 %v2436_v2 }
 0x363   : > { %2259 = vmatmul.mubr.msk.f32.vlgmr.msra.gmra.mxu1 %vm802_vm2, %v1155_v33 }
 0x364   : > { %2268 = vmatprep.mubr.msk.f32.mxu1 %vm2437_vm0, %v2436_v2  ;;  %2267 = vmatpush3.msra.mxu1 %v1461_v35 }
 0x365   : > { %2276 = vmatprep.subr.mxu1 %v2436_v2 }
 0x416   : > { %v1228_v37 = vpop.f32.mrf.mxu0 }
 0x417   : > { %2264 = vmatmul.mubr.msk.f32.vlgmr.msra.gmra.mxu0 %vm802_vm2, %v1228_v37 }
 0x418   : > { %v2245_v38 = vpop.f32.mrf.mxu0  ;;  %2272 = vmatpush3.msra.mxu0 %v1462_v36  ;;  %2273 = vmatprep.mubr.msk.f32.mxu0 %vm2437_vm0, %v2436_v2 }
 0x419   : > { %2281 = vmatprep.subr.mxu0 %v2436_v2 }
 0x41a   : > { %v1304_v40 = vpop.f32.mrf.mxu1 }
 0x41b   : > { %2269 = vmatmul.mubr.msk.f32.vlgmr.msra.gmra.mxu1 %vm802_vm2, %v1304_v40 }
 0x41c   : > { %v2250_v41 = vpop.f32.mrf.mxu1  ;;  %2277 = vmatpush3.msra.mxu1 %v1463_v39  ;;  %2278 = vmatprep.mubr.msk.f32.mxu1 %vm2437_vm0, %v2436_v2 }
 0x41d   : > { %2292 = vmatprep.subr.mxu1 %v2436_v2 }
 0x41f   : > { %v1380_v42 = vpop.f32.mrf.mxu0 }
 0x420   : > { %2274 = vmatmul.mubr.msk.f32.vlgmr.msra.gmra.mxu0 %vm802_vm2, %v1380_v42 }
 0x421   : > { %v2255_v43 = vpop.f32.mrf.mxu0  ;;  %2289 = vmatprep.mubr.msk.f32.mxu0 %vm2437_vm0, %v2436_v2  ;;  %2282 = vmatpush3.msra.mxu0 %v1801_v3 }
 0x422   : > { %2283 = vmatprep.subr.mxu0 %v2436_v2  ;;  %v2113_v43 = vld [vmem:[%s2885_s8] ss:$0 sm:$0xff] }
 0x423   : > { %v1456_v44 = vpop.f32.mrf.mxu1  ;;  %2284 = vmatpush3.msra.mxu0 %v1800_v4 }
 0x424   : > { %2279 = vmatmul.mubr.msk.f32.vlgmr.msra.gmra.mxu1 %vm802_vm2, %v1456_v44  ;;  %2285 = vmatprep.subr.mxu0 %v2436_v2 }
 0x425   : > { %v2260_v45 = vpop.f32.mrf.mxu1  ;;  %2308 = vmatprep.mubr.msk.f32.mxu1 %vm2437_vm0, %v2436_v2  ;;  %2293 = vmatpush3.msra.mxu1 %v1890_v6 }
 0x426   : > { %2294 = vmatprep.subr.mxu1 %v2436_v2  ;;  %v2114_v45 = vld [vmem:[%s2886_s9] ss:$0 sm:$0xff] }
 0x427   : > { %2295 = vmatpush3.msra.mxu1 %v1889_v7 }
 0x428   : > { %2296 = vmatprep.subr.mxu1 %v2436_v2 }
 0x429   : > { %2297 = vmatpush3.msra.mxu1 %v1888_v9 }
 0x42a   : > { %2298 = vmatprep.subr.mxu1 %v2436_v2 }
 0x42b   : > { %2299 = vmatpush3.msra.mxu1 %v1887_v10 }
 0x42c   : > { %2300 = vmatprep.subr.mxu1 %v2436_v2 }
 0x42d   : > { %2301 = vmatpush3.msra.mxu1 %v1886_v11 }
 0x42e   : > { %2302 = vmatprep.subr.mxu1 %v2436_v2 }
 0x42f   : > { %2303 = vmatpush3.msra.mxu1 %v1885_v21 }
 0x430   : > { %2304 = vmatprep.subr.mxu1 %v2436_v2 }
 0x431   : > { %2305 = vmatpush3.msra.mxu1 %v1884_v22 }
 0x432   : > { %2306 = vmatprep.subr.mxu1 %v2436_v2 }
 0x433   : > { %2307 = vmatpush3.msra.mxu1 %v1883_v23 }
 0x4d7   : > { %v1533_v46 = vpop.f32.mrf.mxu0 }
 0x4d9   : > { %v2265_v47 = vpop.f32.mrf.mxu0 }
 0x4db   : > { %v1606_v48 = vpop.f32.mrf.mxu1 }
 0x4dc   : > { %v1756_v51 = vadd.f32 %v1606_v48, %v1533_v46 }
 0x4dd   : > { %v2270_v49 = vpop.f32.mrf.mxu1 }
 0x4e0   : > { %v1679_v50 = vpop.f32.mrf.mxu0 }
 0x4e1   : > { %v1757_v53 = vadd.f32 %v1756_v51, %v1679_v50 }
 0x4e2   : > { %v2275_v52 = vpop.f32.mrf.mxu0 }
 0x4e4   : > { %v1752_v54 = vpop.f32.mrf.mxu1 }
 0x4e5   : > { %v1758_v56 = vadd.f32 %v1757_v53, %v1752_v54 }
 0x4e6   : > { %v2280_v57 = vpop.f32.mrf.mxu1 }
 0x4e7   : > { %v1766_v58 = vadd.f32 %v2106_v55, %v1758_v56 }
 0x4e9   : > { %v1767_v59 = vadd.f32 %v1766_v58, %v2598_v8  ;;  %v1799_v8 = vld [vmem:[%s2887_s10 + $0x8] sm:$0xff] }
 0x4ea   : > { %2286 = vmatpush3.msra.mxu0 %v1799_v8 }
 0x4eb   : > { %v1770_v60 = vsel %vm508_vm1, %v1767_v59, 0.0  ;;  %2287 = vmatprep.subr.mxu0 %v2436_v2 }
 0x4ec   : > { %1771 = vadd.xlane.f32.xlu0 %v1770_v60  ;;  %2288 = vmatpush3.msra.mxu0 %v1798_v5 }
 0x575   : > { %v1772_v61 = vpop.xlane.xlu0 %1771 }
 0x576   : > { %v1774_v62 = vmul.f32 0.03125, %v1772_v61 }
 0x578   : > { %v1775_v63 = vsub.f32 %v1767_v59, %v1774_v62 }
 0x57a   : > { %v1776_v0 = vmul.f32 %v1775_v63, %v1775_v63 }
 0x57c   : > { %v1777_v1 = vsel %vm508_vm1, %v1776_v0, 0.0 }
 0x57d   : > { %1778 = vadd.xlane.f32.xlu1 %v1777_v1 }
 0x606   : > { %v1779_v12 = vpop.xlane.xlu1 %1778 }
 0x607   : > { %v1780_v13 = vmul.f32 0.03125, %v1779_v12 }
 0x609   : > { %v1781_v14 = vadd.f32 1e-05, %v1780_v13 }
 0x60b   : > { %2370 = vrsqrt.f32 %v1781_v14 }
 0x618   : > { %v2371_v15 = vpop.eup %2370 }
 0x619   : > { %v1783_v17 = vmul.f32 %v2371_v15, %v1775_v63 }
 0x61b   : > { %v1790_v19 = vmul.f32 %v2107_v16, %v1783_v17 }
 0x61d   : > { %v1797_v20 = vadd.f32 %v2108_v18, %v1790_v19 }
 0x61f   : > { %2290 = vmatmul.mubr.msk.f32.vlgmr.msra.gmra.mxu0 %vm508_vm1, %v1797_v20 }
 0x6df   : > { %v1878_v26 = vpop.f32.mrf.mxu0 }
 0x6e0   : > { %v1879_v27 = vadd.f32 %v2109_v25, %v1878_v26 }
 0x6e1   : > { %v2291_v28 = vpop.f32.mrf.mxu0 }
 0x6e2   : > { %v1882_v24 = vmax.f32 %v1879_v27, 0.0 }
 0x6e4   : > { %2309 = vmatmul.mubr.msk.f32.vlgmr.msra.gmra.mxu1 %vm1898_vm4, %v1882_v24 }
 0x7a4   : > { %v1968_v30 = vpop.f32.mrf.mxu1 }
 0x7a5   : > { %v1969_v31 = vadd.f32 %v2111_v29, %v1968_v30 }
 0x7a6   : > { %v2310_v32 = vpop.f32.mrf.mxu1 }
 0x7a7   : > { %v1972_v2 = vadd.f32 %v1969_v31, %v1797_v20 }
 0x7a9   : > { %v1975_v33 = vsel %vm508_vm1, %v1972_v2, 0.0 }
 0x7aa   : > { %1976 = vadd.xlane.f32.xlu0 %v1975_v33 }
 0x833   : > { %v1977_v34 = vpop.xlane.xlu0 %1976 }
 0x834   : > { %v1978_v35 = vmul.f32 0.03125, %v1977_v34 }
 0x836   : > { %v1979_v36 = vsub.f32 %v1972_v2, %v1978_v35 }
 0x838   : > { %v1980_v37 = vmul.f32 %v1979_v36, %v1979_v36 }
 0x83a   : > { %v1981_v38 = vsel %vm508_vm1, %v1980_v37, 0.0 }
 0x83b   : > { %1982 = vadd.xlane.f32.xlu0 %v1981_v38 }
 0x8c4   : > { %v1983_v39 = vpop.xlane.xlu0 %1982 }
 0x8c5   : > { %v1984_v40 = vmul.f32 0.03125, %v1983_v39 }
 0x8c7   : > { %v1985_v41 = vadd.f32 1e-05, %v1984_v40 }
 0x8c9   : > { %2372 = vrsqrt.f32 %v1985_v41 }
 0x8d6   : > { %v2373_v42 = vpop.eup %2372 }
 0x8d7   : > { %v1987_v44 = vmul.f32 %v2373_v42, %v1979_v36 }
 0x8d9   : > { %v1994_v46 = vmul.f32 %v2113_v43, %v1987_v44 }
 0x8db   : > { %v2001_v47 = vadd.f32 %v2114_v45, %v1994_v46 }
 0x8dd   : > { %2002 = vst.msk [vmem:[%s458_s26] sm:$0xff] %vm508_vm1, %v2001_v47 }
 0x8de   : > { %2387 = shalt.err (!%p2384_p3)
}
 0x8df   : > { %s2388_s0 = scalar_lea.hbm %s2015_s1, 128  ;;  %s2392_s22 = scalar_lea.hbm %s2891_s14, 256 }
 0x8e0   : > { %p2389_p4 = scmp.ne.s32.totalorder %s2015_s1, %s2388_s0  ;;  %p2393_p9 = scmp.lt.s32.totalorder %s2015_s1, %s2891_s14 }
 0x8e1   : > { %p2394_p10 = scmp.lt.s32.totalorder %s2392_s22, %s2388_s0 }
 0x8e2   : > { %p2390_p7 = pnand %p2389_p4, %p2554_p5 }
 0x8e3   : > { %p2395_p11 = por %p2394_p10, %p2393_p9 }
 0x8e4   : > { %p2391_p8 = pneg %p2390_p7 }
 0x8e6   : > { %p2396_p12 = pnand %p2395_p11, %p2391_p8 }
 0x8e8   : > { %2399 = shalt.err (!%p2396_p12)
}
 0x8e9   : > { %2311 = dma.vmem_to_hbm [thread:$0]  (%p2554_p5), %s2018_s25, 128, %s2015_s1, %s2004_s2  }
 0x8ea PF: > { %p2317_p13 = scmp.ge.s32.totalorder %s2434_s16, 2  ;;  %s2029_s27 = sand.u32 1, %s2422_s29  }
 0x8eb   : > { %s2030_s28 = scalar_lea.sflag [#allocation3], %s2029_s27 }
 0x8ec   : > { %p2314_p0 = pnand %p2317_p13, %p2558_p6 }
 0x8ee   : > { %p2315_p1 = pneg %p2314_p0 }
 0x8f0   : > { %2417 = dma.done.wait (%p2315_p1), %s2030_s28, 128  }
 0x8f1   : > { %2419 = vsyncadd (%p2315_p1), %s2030_s28, 4294967168  ;;  %s2906_s16 = sld [smem:[#allocation6_spill]]  ;;  %s2909_s29 = smov %s2426_s30 }
 0x8f2   : > { %s2907_s18 = sld [smem:[#allocation5_spill]] }
 0x8f3   : > { %s2908_s15 = sld [smem:[#allocation7_spill]] }
 0x8f7   : > { %p24_p2 = scmp.ge.s32.totalorder %s2906_s16, 4  }
 0x8f8   : > { %s2910_s30 = smov %s2907_s18 }
 0x8f9   :  { %26 = sbr.rel (!%p24_p2) target bundleno = 7 (0x7), region = 111 }
 0x8fe   :  { %2035 = vsyncpa [#allocation3], 1 }
 0x8ff   :  { %2037 = vsyncpa [#allocation3 + $0x1], 1 }

</bundles_post_ra>
